<compile_context>
chip_gen: v6e
topology: v6e:2x2x1
jax: 0.10.0
libtpu: 0.0.40
codegen_flags: <defaults>
</compile_context>

<pallas_src>
import jax
import jax.numpy as jnp
from jax.experimental import pallas as pl
from jax.experimental.pallas import tpu as pltpu


# ---------------------------------------------------------------------------
# Pallas kernel
# ---------------------------------------------------------------------------
def _conv1x1_bn_kernel(w_ref, x_ref, shift_ref, o_ref):
    """(Cout, Cin) @ (Cin, TM) + shift -> (Cout, TM), lane-dense along TM."""
    acc = jnp.dot(w_ref[...], x_ref[...], preferred_element_type=jnp.float32)
    o_ref[...] = (acc + shift_ref[...]).astype(o_ref.dtype)


# ---------------------------------------------------------------------------
# Wrapper
# ---------------------------------------------------------------------------
def _pick_spatial_tile(hw, cin, cout, itemsize, *,
                       vmem_budget_bytes=8 << 20, max_tile=8192):
    """Largest lane tile (multiple of 128) whose double-buffered x+out fit the budget."""
    per_lane = (cin + cout) * itemsize * 2  # x tile + out tile, double-buffered
    tm = (vmem_budget_bytes // max(per_lane, 1)) // 128 * 128
    tm = max(128, min(int(tm), max_tile))
    if hw <= tm:
        return hw  # single full-extent block (full-dim lane size is always legal)
    return tm


def conv1x1_bn(x_nchw, weight, bn_gamma, bn_beta, bn_mean, bn_var, *,
               stride, eps=1e-5):
    """1x1 conv (stride s, no bias) + BatchNorm2d (inference) fused Pallas matmul."""
    n, cin, h, w = x_nchw.shape
    cout = weight.shape[0]
    dtype = x_nchw.dtype

    # Strided 1x1 conv == spatial subsampling followed by a channel matmul.
    x_s = x_nchw if stride == 1 else x_nchw[:, :, ::stride, ::stride]
    ho, wo = x_s.shape[2], x_s.shape[3]
    hw = ho * wo
    # NCHW already has channels before spatial -> (N, Cin, Ho*Wo) is a free reshape.
    x_cm = x_s.reshape(n, cin, hw)

    # Fold BN into the weights: y = (scale * W) @ x + shift.
    scale = (bn_gamma / jnp.sqrt(bn_var + eps)).astype(jnp.float32)          # (Cout,)
    shift = (bn_beta - bn_mean * scale).astype(jnp.float32).reshape(cout, 1)  # (Cout,1)
    w_mat = (weight.reshape(cout, cin).astype(jnp.float32)
             * scale[:, None]).astype(dtype)                                  # (Cout,Cin)

    tm = _pick_spatial_tile(hw, cin, cout, jnp.dtype(dtype).itemsize)
    grid = (n, pl.cdiv(hw, tm))  # ragged last spatial block handled by Pallas

    out = pl.pallas_call(
        _conv1x1_bn_kernel,
        out_shape=jax.ShapeDtypeStruct((n, cout, hw), dtype),
        grid_spec=pltpu.PrefetchScalarGridSpec(
            num_scalar_prefetch=0,
            grid=grid,
            in_specs=[
                pl.BlockSpec((cout, cin), lambda b, i: (0, 0)),      # folded weights
                pl.BlockSpec((None, cin, tm), lambda b, i: (b, 0, i)),  # x rows (Cin,TM)
                pl.BlockSpec((cout, 1), lambda b, i: (0, 0)),        # BN shift
            ],
            out_specs=pl.BlockSpec((None, cout, tm), lambda b, i: (b, 0, i)),
        ),
        compiler_params=pltpu.CompilerParams(
            dimension_semantics=("parallel", "parallel")),
    )(w_mat, x_cm, shift)

    # (N, Cout, Ho*Wo) -> (N, Cout, Ho, Wo): free reshape, no transpose.
    return out.reshape(n, cout, ho, wo)


class Identity:
    """JAX/Pallas port of the PyTorch `Identity` module."""

    def __init__(self, inp, oup, stride, key=None):
        self.inp = inp
        self.oup = oup
        self.stride = stride
        if stride != 1 or inp != oup:
            if key is None:
                key = jax.random.PRNGKey(0)
            k_w, k_g, k_b = jax.random.split(key, 3)
            # Conv2d(inp, oup, 1, stride, bias=False) weight: (oup, inp, 1, 1)
            fan_in = inp  # kernel_size = 1
            bound = 1.0 / (fan_in ** 0.5)
            self.weight = jax.random.uniform(
                k_w, (oup, inp, 1, 1), jnp.float32, -bound, bound)
            # BatchNorm2d(oup): inference-mode running stats folded at call time.
            self.bn_gamma = 1.0 + 0.1 * jax.random.normal(k_g, (oup,), jnp.float32)
            self.bn_beta = 0.1 * jax.random.normal(k_b, (oup,), jnp.float32)
            self.bn_mean = jnp.zeros((oup,), jnp.float32)
            self.bn_var = jnp.ones((oup,), jnp.float32)
            self.downsample = True
        else:
            self.downsample = False

    def __call__(self, x_nchw):
        if self.downsample:
            return conv1x1_bn(
                x_nchw, self.weight, self.bn_gamma, self.bn_beta,
                self.bn_mean, self.bn_var, stride=self.stride)
        # True passthrough: the PyTorch module returns x unchanged — zero cost.
        return x_nchw


# ---------------------------------------------------------------------------
# Main
# ---------------------------------------------------------------------------
if __name__ == "__main__":
    key = jax.random.PRNGKey(0)
    k_x, k_p = jax.random.split(key)

    n, cin, h, w = 2, 4, 16, 16
    cout, stride = 8, 2
    x = jax.random.normal(k_x, (n, cin, h, w), jnp.float32)

    # --- Downsample path: stride=2, channel change ---
    mod = Identity(cin, cout, stride, key=k_p)
    y = jax.block_until_ready(mod(x))
    assert y.shape == (n, cout, h // stride, w // stride), y.shape

    # Pure-JAX reference.
    x_s = x[:, :, ::stride, ::stride]
    w_mat = mod.weight.reshape(cout, cin)
    ref = jnp.einsum("oc,nchw->nohw", w_mat, x_s)
    scale = mod.bn_gamma / jnp.sqrt(mod.bn_var + 1e-5)
    shift = mod.bn_beta - mod.bn_mean * scale
    ref = ref * scale[None, :, None, None] + shift[None, :, None, None]
    assert jnp.allclose(y, ref, atol=1e-4, rtol=1e-4)

    # --- Downsample path: stride=1 but channel change (no strided slice) ---
    mod_c = Identity(cin, cout, 1, key=k_p)
    y_c = jax.block_until_ready(mod_c(x))
    assert y_c.shape == (n, cout, h, w), y_c.shape
    ref_c = jnp.einsum("oc,nchw->nohw", mod_c.weight.reshape(cout, cin), x)
    scale_c = mod_c.bn_gamma / jnp.sqrt(mod_c.bn_var + 1e-5)
    shift_c = mod_c.bn_beta - mod_c.bn_mean * scale_c
    ref_c = ref_c * scale_c[None, :, None, None] + shift_c[None, :, None, None]
    assert jnp.allclose(y_c, ref_c, atol=1e-4, rtol=1e-4)

    # --- Passthrough path: stride=1 and inp == oup ---
    mod_id = Identity(cin, cin, 1)
    y_id = jax.block_until_ready(mod_id(x))
    assert y_id.shape == x.shape
    assert jnp.array_equal(y_id, x)

    print("KERNEL_OK")
</pallas_src>

<mosaic_0001>
module attributes {stable_mosaic.version = 11 : i64} {
  func.func @_conv1x1_bn_kernel(%arg0: i32, %arg1: i32, %arg2: memref<8x4xf32, #tpu.memory_space<vmem>>, %arg3: memref<1x4x64xf32, #tpu.memory_space<vmem>>, %arg4: memref<8x1xf32, #tpu.memory_space<vmem>>, %arg5: memref<1x8x64xf32, #tpu.memory_space<vmem>>) attributes {dimension_semantics = [#tpu.dimension_semantics<parallel>, #tpu.dimension_semantics<parallel>], iteration_bounds = array<i64: 2, 1>, scalar_prefetch = 0 : i64, scratch_operands = 0 : i64, tpu.core_type = #tpu.core_type<tc>, window_params = [{pipeline_mode = #tpu.pipeline_mode<synchronous>, transform_indices = @transform_0, window_bounds = array<i64: 8, 4>}, {transform_indices = @transform_1, window_bounds = array<i64: 1, 4, 64>}, {pipeline_mode = #tpu.pipeline_mode<synchronous>, transform_indices = @transform_2, window_bounds = array<i64: 8, 1>}, {transform_indices = @transform_3, window_bounds = array<i64: 1, 8, 64>}]} {
    %c0 = arith.constant 0 : index
    %c0_0 = arith.constant 0 : index
    %0 = vector.load %arg2[%c0, %c0_0] : memref<8x4xf32, #tpu.memory_space<vmem>>, vector<8x4xf32>
    %c0_1 = arith.constant 0 : index
    %c0_2 = arith.constant 0 : index
    %c0_3 = arith.constant 0 : index
    %1 = vector.load %arg3[%c0_1, %c0_2, %c0_3] : memref<1x4x64xf32, #tpu.memory_space<vmem>>, vector<1x4x64xf32>
    %2 = vector.shape_cast %1 : vector<1x4x64xf32> to vector<4x64xf32>
    %cst = arith.constant dense<0.000000e+00> : vector<8x64xf32>
    %3 = tpu.matmul %0, %2, %cst {dimension_numbers = #tpu.dot_dimension_numbers<[1], [0], [0], [1], [0, 0, 1, 1], [], []>} : vector<8x4xf32>, vector<4x64xf32>, vector<8x64xf32> -> vector<8x64xf32>
    %c0_4 = arith.constant 0 : index
    %c0_5 = arith.constant 0 : index
    %4 = vector.load %arg4[%c0_4, %c0_5] : memref<8x1xf32, #tpu.memory_space<vmem>>, vector<8x1xf32>
    %5 = vector.broadcast %4 : vector<8x1xf32> to vector<8x64xf32>
    %6 = arith.addf %3, %5 : vector<8x64xf32>
    %c0_6 = arith.constant 0 : index
    %c0_7 = arith.constant 0 : index
    %c0_8 = arith.constant 0 : index
    %7 = vector.load %arg5[%c0_6, %c0_7, %c0_8] : memref<1x8x64xf32, #tpu.memory_space<vmem>>, vector<1x8x64xf32>
    %8 = vector.shape_cast %7 : vector<1x8x64xf32> to vector<8x64xf32>
    %9 = vector.shape_cast %6 : vector<8x64xf32> to vector<1x8x64xf32>
    tpu.vector_store %arg5[%c0_6, %c0_7, %c0_8], %9 {strides = array<i32>} : memref<1x8x64xf32, #tpu.memory_space<vmem>>, vector<1x8x64xf32>,
    return
  }
  func.func @transform_0(%arg0: i32, %arg1: i32) -> (i32, i32) {
    %c0_i32 = arith.constant 0 : i32
    %c0_i32_0 = arith.constant 0 : i32
    %c0_i32_1 = arith.constant 0 : i32
    return %c0_i32, %c0_i32_0 : i32, i32
  }
  func.func @transform_1(%arg0: i32, %arg1: i32) -> (i32, i32, i32) {
    %c0_i32 = arith.constant 0 : i32
    %c0_i32_0 = arith.constant 0 : i32
    return %arg0, %c0_i32, %arg1 : i32, i32, i32
  }
  func.func @transform_2(%arg0: i32, %arg1: i32) -> (i32, i32) {
    %c0_i32 = arith.constant 0 : i32
    %c0_i32_0 = arith.constant 0 : i32
    %c0_i32_1 = arith.constant 0 : i32
    return %c0_i32, %c0_i32_0 : i32, i32
  }
  func.func @transform_3(%arg0: i32, %arg1: i32) -> (i32, i32, i32) {
    %c0_i32 = arith.constant 0 : i32
    %c0_i32_0 = arith.constant 0 : i32
    return %arg0, %c0_i32, %arg1 : i32, i32, i32
  }
}

</mosaic_0001>

<bundles_post_ra>
// kernel: tpu_custom_call.1
= control target key start
LH: loop header
LB: loop body
LE: loop exit
PB: predicated region body
PF: predicated region fallthrough
CT: control target
= control target key end

     0   :  { %8 = vsyncpa [#allocation3], 0  ;;  %s657_s0 = inlined_call_operand.vmem [shape: f32[8,4], index: 0, kind: input, shape index: {}]   ;;  %s658_s1 = inlined_call_operand.vmem [shape: f32[2,4,64], index: 1, kind: input, shape index: {}]   ;;  %s659_s2 = inlined_call_operand.vmem [shape: f32[8,1], index: 2, kind: input, shape index: {}]   ;;  %s660_s3 = inlined_call_operand.hbm [shape: f32[2,8,64], index: 3, kind: output, shape index: {}]  }
   0x1   :  { %10 = vsyncpa [#allocation3 + $0x1], 0  ;;  %s546_s12 = smov 0   ;;  %s548_s13 = smov 0  }
   0x2   :  { %s550_s14 = smov 0   ;;  %s552_s15 = smov 0  }
   0x3   :  { %s554_s16 = smov 0   ;;  %s556_s17 = smov 0  }
   0x4 LB: > { %s365_s18 = sadd.s32 4294967295, %s520_s17   ;;  %s366_s19 = sadd.s32 4294967294, %s520_s17   ;;  %s520_s17 = sphi %s556_s17, %s16_s17   ;;  %s516_s16 = sphi %s554_s16, %s667_s16   ;;  %s512_s15 = sphi %s552_s15, %s666_s15   ;;  %s508_s14 = sphi %s550_s14, %s665_s14   ;;  %s504_s13 = sphi %s548_s13, %s664_s13   ;;  %s500_s12 = sphi %s546_s12, %s663_s12  }
   0x5   : > { %s28_s20 = sadd.s32 1, %s516_s16  ;;  %s107_s21 = sadd.s32 1, %s508_s14 }
   0x6   : > { %p30_p0 = scmp.ge.s32.totalorder %s28_s20, 2  ;;  %p117_p1 = scmp.ne.s32.totalorder %s508_s14, %s504_s13 }
   0x7   : > { %p118_p2 = scmp.eq.s32.totalorder %s365_s18, 1  ;;  %p123_p3 = scmp.ne.s32.totalorder %s504_s13, %s500_s12 }
   0x8   : > { %s669_s20 = smov (%p30_p0, %s28_s20), 0  ;;  %p124_p5 = scmp.eq.s32.totalorder %s366_s19, 1 }
   0x9   : > { %p586_p4 = por %p118_p2, %p117_p1  ;;  %s102_s23 = ssub.s32 %s516_s16, %s669_s20 }
   0xa   : > { %p369_p6 = scmp.ge.s32.totalorder %s520_s17, 1  ;;  %p105_p7 = scmp.eq.s32.totalorder %s102_s23, 0 }
   0xb   : > { %p593_p8 = por %p124_p5, %p123_p3  ;;  %p158_p9 = scmp.lt.s32.totalorder %s520_s17, 3 }
   0xc   : > { %s599_s25 = scalar_select %p105_p7, %s508_s14, %s107_s21  }
   0xd   : > { %p159_p10 = pnand %p369_p6, %p158_p9 }
   0xe   : > { %p184_p11 = scmp.lt.s32.totalorder (!%p159_p10), %s512_s15, 1  ;;  %s181_s8 = sand.u32 (!%p159_p10), 1, %s504_s13  }
   0xf   : > { %162 = sbr.rel (%p159_p10) target bundleno = 234 (0xea), region = 32  ;;  %s370_s9 = sshll.u32 (!%p159_p10), %s181_s8, 3 }
  0x10   : > { %s375_s10 = sshll.u32 (!%p159_p10), %s512_s15, 7  ;;  %s183_s11 = scalar_lea.vmem (!%p159_p10), [#allocation2], %s370_s9 }
  0x11   : > { %s294_s18 = sshll.u32 (!%p159_p10), %s183_s11, 4  ;;  %s617_s23 = scalar_lea.hbm (!%p159_p10), %s660_s3, %s375_s10  ;;  %s295_s18 = int_to_ptr.vmem [resolvable:$true] %s294_s18 }
  0x12   : > { %s280_s26 = scalar_lea.sflag (!%p159_p10), [#allocation3], %s181_s8  ;;  %s444_s27 = scalar_lea.vmem (!%p159_p10), %s295_s18, 128 }
  0x13   : > { %p445_p12 = scmp.ne.s32.totalorder (!%p159_p10), %s295_s18, %s444_s27 }
  0x14   : > { %v522_v0 = vmov 0.0   ;;  %vm523_vm0 = vmmov 0   ;;  %v193_v1 = vld [vmem:[%s659_s2] sm:$0xff]  ;;  %s185_s28 = scalar_select %p184_p11, %s512_s15, 1  ;;  %v524_v2 = vmov 0   ;;  %vm203_vm1 = vcmask 1043456  }
  0x15   : > { %380 = vmatprep.subr.mxu0 %v522_v0  ;;  %382 = vmatprep.mubr.msk.f32.mxu0 %vm523_vm0, %v522_v0  ;;  %v191_v3 = vld [vmem:[%s657_s0] sm:$0xff]  ;;  %vm199_vm2 = vcmask 31744   ;;  %vm277_vm3 = vcmask 523264   ;;  %p446_p13 = pnand %p445_p12, %p586_p4  ;;  %s525_s15 = smov [#allocation2]  }
  0x16   : > { %443 = vset.pattern.permute.xlu0 %v524_v2  ;;  %s371_s29 = sshll.u32 %s185_s28, 2  ;;  %s448_s28 = sshll.u32 %s525_s15, 4  ;;  %s449_s28 = int_to_ptr.vmem [resolvable:$false] %s448_s28 }
  0x17   : > { %196 = vperm.xlu0 %443, %v193_v1   ;;  %s190_s5 = scalar_lea.vmem %s658_s1, %s371_s29  ;;  %p447_p0 = pneg %p446_p13 }
  0x18   : > { %v192_v4 = vld [vmem:[%s190_s5] sm:$0xf]  ;;  %s450_s29 = scalar_lea.vmem %s449_s28, 256  ;;  %p451_p1 = scmp.lt.s32.totalorder %s295_s18, %s449_s28 }
  0x19   : > { %381 = vmatpush3.msk.msra.mxu0 %vm203_vm1, %v192_v4  ;;  %p452_p2 = scmp.lt.s32.totalorder %s450_s29, %s444_s27 }
  0x1a   : > { %383 = vmatmul.mubr.msk.f32.vlgmr.msra.gmra.mxu0 %vm199_vm2, %v191_v3 }
  0x1b   : > { %p453_p3 = por %p452_p2, %p451_p1 }
  0x1d   : > { %p454_p5 = pnand %p453_p3, %p447_p0 }
  0x92   : > { %v197_v5 = vpop.permute.xlu0 %196 }
  0xda   : > { %v273_v6 = vpop.f32.mrf.mxu0 }
  0xdb   : > { %v274_v7 = vadd.f32 %v273_v6, %v197_v5 }
  0xdc   : > { %v384_v8 = vpop.f32.mrf.mxu0 }
  0xdd   : > { %278 = vst.msk [vmem:[%s183_s11] sm:$0xff] %vm277_vm3, %v274_v7 }
  0xde   : > { %457 = shalt.err (!%p454_p5)
}
  0xdf   : > { %s458_s30 = scalar_lea.hbm %s617_s23, 128  ;;  %s462_s6 = scalar_lea.hbm %s660_s3, 256 }
  0xe0   : > { %p459_p6 = scmp.ne.s32.totalorder %s617_s23, %s458_s30  ;;  %p463_p10 = scmp.lt.s32.totalorder %s617_s23, %s660_s3 }
  0xe1   : > { %p464_p11 = scmp.lt.s32.totalorder %s462_s6, %s458_s30 }
  0xe2   : > { %p460_p7 = pnand %p459_p6, %p586_p4 }
  0xe3   : > { %p465_p12 = por %p464_p11, %p463_p10 }
  0xe4   : > { %p461_p9 = pneg %p460_p7 }
  0xe6   : > { %p466_p13 = pnand %p465_p12, %p461_p9 }
  0xe8   : > { %469 = shalt.err (!%p466_p13)
}
  0xe9   : > { %385 = dma.vmem_to_hbm [thread:$0]  (%p586_p4), %s295_s18, 128, %s617_s23, %s280_s26  }
  0xea PF: > { %p391_p0 = scmp.ge.s32.totalorder %s520_s17, 2  ;;  %s306_s9 = sand.u32 1, %s500_s12  }
  0xeb   : > { %s307_s10 = scalar_lea.sflag [#allocation3], %s306_s9 }
  0xec   : > { %p388_p1 = pnand %p391_p0, %p593_p8 }
  0xee   : > { %p389_p2 = pneg %p388_p1 }
  0xf0   : > { %495 = dma.done.wait (%p389_p2), %s307_s10, 128  }
  0xf1   : > { %497 = vsyncadd (%p389_p2), %s307_s10, 4294967168  ;;  %s16_s17 = sadd.s32 1, %s520_s17   ;;  %s663_s12 = smov %s504_s13 }
  0xf2   : > { %p13_p3 = scmp.ge.s32.totalorder %s16_s17, 4   ;;  %s664_s13 = smov %s508_s14 }
  0xf3   : > { %s665_s14 = smov %s599_s25  ;;  %s666_s15 = smov %s516_s16 }
  0xf4   : > { %s667_s16 = smov %s669_s20  ;;  %15 = sbr.rel (!%p13_p3) target bundleno = 4 (0x4), region = 67 }
  0xf9   :  { %312 = vsyncpa [#allocation3], 1 }
  0xfa   :  { %314 = vsyncpa [#allocation3 + $0x1], 1 }

</bundles_post_ra>
